<compile_context>
chip_gen: v7x
topology: tpu7x:2x2x1
jax: 0.10.0
libtpu: 0.0.40
codegen_flags: <defaults>
</compile_context>

<pallas_src>
import jax
import jax.numpy as jnp
from jax.experimental import pallas as pl
from jax.experimental.pallas import tpu as pltpu


def _logreg_kernel(x_ref, w_ref, b_ref, o_ref):
    # x_ref: (sub, 128, F) VMEM   w_ref: (1, F) VMEM   b_ref: (1,) SMEM
    # o_ref: (sub, 128) VMEM  -- lane-dense output slab for this batch tile.
    x = x_ref[...]
    w = w_ref[...]                              # (1, F) -> broadcasts over all rows
    z = jnp.sum(x * w, axis=-1) + b_ref[0]      # VPU multiply + XLU lane reduce + scalar bias
    e = jnp.exp(-z)                             # EUP transcendental (otherwise-idle slot)
    o_ref[...] = (1.0 / (1.0 + e)).astype(o_ref.dtype)


def _pick_tile_and_limit(R, F, itemsize):
    """Pick `sub` (row-groups of 128 per grid step) and an explicit VMEM limit."""
    try:
        vmem_cap = pltpu.get_tpu_info().vmem_capacity_bytes
    except Exception:
        vmem_cap = 64 * 1024 * 1024             # conservative (v7x physical)
    vmem_limit = min(vmem_cap // 2, 64 * 1024 * 1024)   # v5e/v6e: 64 MiB, v7x: 32 MiB

    # Double-buffered x tiles get ~half the scoped limit; rest is headroom for
    # the resident weight row, the output double-buffer and compiler scratch.
    tile_row_bytes = 128 * F * itemsize          # one row-group of 128 batch rows
    sub = max(8, (vmem_limit // 4) // max(tile_row_bytes, 1))
    sub = min(512, (sub // 8) * 8)               # multiple of 8 (sublane) when tiled
    if R <= sub:
        sub = R                                  # single tile: block == full extent
    return sub, vmem_limit


@jax.jit
def logistic_regression(x, w, b):
    """sigmoid(x @ w + b) via a batch-tiled Pallas TPU kernel.

    x: [B, F] float32; w: [F, 1] (or [1, F]); b: any 1-element array. -> [B, 1]
    """
    B, F = x.shape
    w_row = w.reshape(1, F).astype(x.dtype)
    b_flat = b.reshape(1).astype(jnp.float32)

    # Pad batch only up to the next multiple of 128 (lane width); no-op when aligned.
    R = pl.cdiv(B, 128)
    b_pad = R * 128
    if b_pad != B:
        x = jnp.pad(x, ((0, b_pad - B), (0, 0)))
    x3 = x.reshape(R, 128, F)                    # free row-major reshape

    sub, vmem_limit = _pick_tile_and_limit(R, F, x.dtype.itemsize)
    nt = pl.cdiv(R, sub)                         # ragged last tile handled by Pallas

    out = pl.pallas_call(
        _logreg_kernel,
        out_shape=jax.ShapeDtypeStruct((R, 128), x.dtype),
        grid_spec=pltpu.PrefetchScalarGridSpec(
            num_scalar_prefetch=0,
            grid=(nt,),
            in_specs=[
                # Batch tile of x, streamed (double-buffered) across the grid.
                pl.BlockSpec((sub, 128, F), lambda i: (i, 0, 0)),
                # Weight row stays resident in VMEM for every grid step.
                pl.BlockSpec((1, F), lambda i: (0, 0)),
                # Bias scalar lives in SMEM.
                pl.BlockSpec(memory_space=pltpu.MemorySpace.SMEM),
            ],
            out_specs=pl.BlockSpec((sub, 128), lambda i: (i, 0)),
        ),
        compiler_params=pltpu.CompilerParams(
            dimension_semantics=("parallel",),   # shard batch tiles across TCs (v7x)
            vmem_limit_bytes=vmem_limit,
        ),
    )(x3, w_row, b_flat)

    # (R, 128) -> (B, 1), dropping any padded rows.
    return out.reshape(b_pad)[:B].reshape(B, 1)


if __name__ == "__main__":
    key = jax.random.PRNGKey(0)
    kx, kw, kb = jax.random.split(key, 3)

    B, F = 8, 32                      # batch=8, n_input_features=32
    x = jax.random.normal(kx, (B, F), dtype=jnp.float32)

    # Deterministic parameter init (mimics nn.Linear's uniform(-1/sqrt(F), 1/sqrt(F)))
    bound = 1.0 / jnp.sqrt(jnp.float32(F))
    w = jax.random.uniform(kw, (F, 1), minval=-bound, maxval=bound, dtype=jnp.float32)
    bb = jax.random.uniform(kb, (1, 1), minval=-bound, maxval=bound, dtype=jnp.float32)

    out = logistic_regression(x, w, bb)
    jax.block_until_ready(out)

    # Reference check in plain JAX
    ref = jax.nn.sigmoid(x @ w + bb)
    assert out.shape == (B, 1)
    assert jnp.allclose(out, ref, atol=1e-5, rtol=1e-5)
    print("KERNEL_OK")
</pallas_src>

<mosaic_0001>
module attributes {stable_mosaic.version = 11 : i64} {
  func.func @_logreg_kernel(%arg0: i32, %arg1: memref<1x128x32xf32, #tpu.memory_space<vmem>>, %arg2: memref<1x32xf32, #tpu.memory_space<vmem>>, %arg3: memref<1xf32, #tpu.memory_space<smem>>, %arg4: memref<1x128xf32, #tpu.memory_space<vmem>>) attributes {dimension_semantics = [#tpu.dimension_semantics<parallel>], iteration_bounds = array<i64: 1>, scalar_prefetch = 0 : i64, scratch_operands = 0 : i64, tpu.core_type = #tpu.core_type<tc>, window_params = [{transform_indices = @transform_0, window_bounds = array<i64: 1, 128, 32>}, {pipeline_mode = #tpu.pipeline_mode<synchronous>, transform_indices = @transform_1, window_bounds = array<i64: 1, 32>}, {transform_indices = @transform_2, window_bounds = array<i64: 1>}, {transform_indices = @transform_3, window_bounds = array<i64: 1, 128>}]} {
    %c0 = arith.constant 0 : index
    %c0_0 = arith.constant 0 : index
    %c0_1 = arith.constant 0 : index
    %0 = vector.load %arg1[%c0, %c0_0, %c0_1] : memref<1x128x32xf32, #tpu.memory_space<vmem>>, vector<1x128x32xf32>
    %c0_2 = arith.constant 0 : index
    %c0_3 = arith.constant 0 : index
    %1 = vector.load %arg2[%c0_2, %c0_3] : memref<1x32xf32, #tpu.memory_space<vmem>>, vector<1x32xf32>
    %2 = vector.shape_cast %1 : vector<1x32xf32> to vector<1x1x32xf32>
    %3 = vector.broadcast %2 : vector<1x1x32xf32> to vector<1x128x32xf32>
    %4 = arith.mulf %0, %3 : vector<1x128x32xf32>
    %cst = arith.constant dense<0.000000e+00> : vector<1x128xf32>
    %5 = vector.multi_reduction <add>, %4, %cst [2] : vector<1x128x32xf32> to vector<1x128xf32>
    %c0_4 = arith.constant 0 : index
    %6 = memref.load %arg3[%c0_4] : memref<1xf32, #tpu.memory_space<smem>>
    %7 = vector.broadcast %6 : f32 to vector<1x128xf32>
    %8 = arith.addf %5, %7 : vector<1x128xf32>
    %cst_5 = arith.constant 0.000000e+00 : f32
    %9 = vector.broadcast %cst_5 : f32 to vector<1x128xf32>
    %10 = arith.subf %9, %8 : vector<1x128xf32>
    %11 = math.exp %10 : vector<1x128xf32>
    %cst_6 = arith.constant 1.000000e+00 : f32
    %12 = vector.broadcast %cst_6 : f32 to vector<1x128xf32>
    %13 = arith.addf %12, %11 : vector<1x128xf32>
    %cst_7 = arith.constant 1.000000e+00 : f32
    %14 = vector.broadcast %cst_7 : f32 to vector<1x128xf32>
    %15 = arith.divf %14, %13 : vector<1x128xf32>
    %c0_8 = arith.constant 0 : index
    %c0_9 = arith.constant 0 : index
    %16 = vector.load %arg4[%c0_8, %c0_9] : memref<1x128xf32, #tpu.memory_space<vmem>>, vector<1x128xf32>
    tpu.vector_store %arg4[%c0_8, %c0_9], %15 {strides = array<i32>} : memref<1x128xf32, #tpu.memory_space<vmem>>, vector<1x128xf32>,
    return
  }
  func.func @transform_0(%arg0: i32) -> (i32, i32, i32) {
    %c0_i32 = arith.constant 0 : i32
    %c0_i32_0 = arith.constant 0 : i32
    %c0_i32_1 = arith.constant 0 : i32
    return %arg0, %c0_i32, %c0_i32_0 : i32, i32, i32
  }
  func.func @transform_1(%arg0: i32) -> (i32, i32) {
    %c0_i32 = arith.constant 0 : i32
    %c0_i32_0 = arith.constant 0 : i32
    %c0_i32_1 = arith.constant 0 : i32
    return %c0_i32, %c0_i32_0 : i32, i32
  }
  func.func @transform_2(%arg0: i32) -> i32 {
    %c0_i32 = arith.constant 0 : i32
    %c0_i32_0 = arith.constant 0 : i32
    return %c0_i32 : i32
  }
  func.func @transform_3(%arg0: i32) -> (i32, i32) {
    %c0_i32 = arith.constant 0 : i32
    %c0_i32_0 = arith.constant 0 : i32
    return %arg0, %c0_i32 : i32, i32
  }
}

</mosaic_0001>

<bundles_post_ra>
// kernel: logistic_regression.1
= control target key start
LH: loop header
LB: loop body
LE: loop exit
PB: predicated region body
PF: predicated region fallthrough
CT: control target
= control target key end

     0   :  { %vm54_vm0 = vcmask 261120   ;;  %vm244_vm1 = vcmask 130112   ;;  %vm251_vm2 = vcmask 195712   ;;  %vm258_vm3 = vcmask 261312   ;;  %s568_s0 = inlined_call_operand.vmem [shape: f32[1,128,32], index: 0, kind: input, shape index: {}]   ;;  %s569_s1 = inlined_call_operand.vmem [shape: f32[1,32], index: 1, kind: input, shape index: {}]   ;;  %s570_s2 = inlined_call_operand.<no memory space> [shape: f32[1], index: 2, kind: input, shape index: {}]   ;;  %s571_s3 = inlined_call_operand.vmem [shape: f32[1,128], index: 3, kind: output, shape index: {}]  }
   0x1   :  { %v15_v0 = vld [vmem:[%s568_s0] sm:$0xff]  ;;  %v17_v2 = vld [vmem:[%s568_s0 + $0x10] sm:$0xff]  ;;  %v16_v5 = vld [vmem:[%s568_s0 + $0x8] sm:$0xff]  ;;  %v505_v49 = vstv %s570_s2  ;;  %vm265_vm4 = vcmask 326912   ;;  %vm272_vm5 = vcmask 392512   ;;  %vm279_vm6 = vcmask 458112  }
   0x2   :  { %v350_v1 = vld [vmem:[%s569_s1] ss:$0 sm:$0xff]  ;;  %v18_v6 = vld [vmem:[%s568_s0 + $0x18] sm:$0xff]  ;;  %v20_v10 = vld [vmem:[%s568_s0 + $0x28] sm:$0xff]  ;;  %vm286_vm7 = vcmask 523712   ;;  %vm293_vm8 = vcmask 589312  }
   0x3   :  { %v38_v3 = vmul.f32 %v350_v1, %v15_v0  ;;  %v40_v4 = vmul.f32 %v350_v1, %v17_v2  ;;  %v39_v7 = vmul.f32 %v350_v1, %v16_v5  ;;  %v41_v8 = vmul.f32 %v350_v1, %v18_v6  ;;  %v19_v9 = vld [vmem:[%s568_s0 + $0x20] sm:$0xff]  ;;  %v21_v17 = vld [vmem:[%s568_s0 + $0x30] sm:$0xff]  ;;  %v22_v18 = vld [vmem:[%s568_s0 + $0x38] sm:$0xff] }
   0x4   :  { %v42_v15 = vmul.f32 %v350_v1, %v19_v9  ;;  %v43_v16 = vmul.f32 %v350_v1, %v20_v10  ;;  %v44_v21 = vmul.f32 %v350_v1, %v21_v17  ;;  %v45_v22 = vmul.f32 %v350_v1, %v22_v18  ;;  %v23_v23 = vld [vmem:[%s568_s0 + $0x40] sm:$0xff]  ;;  %v24_v24 = vld [vmem:[%s568_s0 + $0x48] sm:$0xff]  ;;  %v25_v29 = vld [vmem:[%s568_s0 + $0x50] sm:$0xff] }
   0x5   :  { %v55_v11 = vsel %vm54_vm0, %v38_v3, 0.0  ;;  %v61_v12 = vsel %vm54_vm0, %v40_v4, 0.0  ;;  %v58_v13 = vsel %vm54_vm0, %v39_v7, 0.0  ;;  %v64_v14 = vsel %vm54_vm0, %v41_v8, 0.0  ;;  %v26_v30 = vld [vmem:[%s568_s0 + $0x58] sm:$0xff]  ;;  %v27_v35 = vld [vmem:[%s568_s0 + $0x60] sm:$0xff] }
   0x6   :  { %56 = vadd.xlane.f32.xlu0 %v55_v11  ;;  %62 = vadd.xlane.f32.xlu1 %v61_v12  ;;  %v67_v19 = vsel %vm54_vm0, %v42_v15, 0.0  ;;  %v70_v20 = vsel %vm54_vm0, %v43_v16, 0.0  ;;  %v73_v25 = vsel %vm54_vm0, %v44_v21, 0.0  ;;  %v76_v26 = vsel %vm54_vm0, %v45_v22, 0.0  ;;  %v28_v36 = vld [vmem:[%s568_s0 + $0x68] sm:$0xff]  ;;  %v29_v41 = vld [vmem:[%s568_s0 + $0x70] sm:$0xff] }
   0x7   :  { %v46_v27 = vmul.f32 %v350_v1, %v23_v23  ;;  %v47_v28 = vmul.f32 %v350_v1, %v24_v24  ;;  %v48_v33 = vmul.f32 %v350_v1, %v25_v29  ;;  %v49_v34 = vmul.f32 %v350_v1, %v26_v30  ;;  %v30_v42 = vld [vmem:[%s568_s0 + $0x78] sm:$0xff] }
   0x8   :  { %v50_v39 = vmul.f32 %v350_v1, %v27_v35  ;;  %v51_v40 = vmul.f32 %v350_v1, %v28_v36  ;;  %v52_v45 = vmul.f32 %v350_v1, %v29_v41  ;;  %v53_v46 = vmul.f32 %v350_v1, %v30_v42 }
   0x9   :  { %v79_v31 = vsel %vm54_vm0, %v46_v27, 0.0  ;;  %v82_v32 = vsel %vm54_vm0, %v47_v28, 0.0  ;;  %v85_v37 = vsel %vm54_vm0, %v48_v33, 0.0  ;;  %v88_v38 = vsel %vm54_vm0, %v49_v34, 0.0 }
   0xa   :  { %59 = vadd.xlane.f32.xlu0 %v58_v13  ;;  %65 = vadd.xlane.f32.xlu1 %v64_v14  ;;  %v91_v43 = vsel %vm54_vm0, %v50_v39, 0.0  ;;  %v94_v44 = vsel %vm54_vm0, %v51_v40, 0.0  ;;  %v97_v47 = vsel %vm54_vm0, %v52_v45, 0.0  ;;  %v100_v48 = vsel %vm54_vm0, %v53_v46, 0.0 }
   0xb   :  { %v233_v16 = vlaneseq  ;;  %vm300_vm9 = vcmask 654912   ;;  %vm307_vm10 = vcmask 720512   ;;  %vm314_vm11 = vcmask 786112  }
   0xc   :  { %vm321_vm12 = vcmask 851712   ;;  %vm328_vm13 = vcmask 917312   ;;  %vm335_vm14 = vcmask 982912   ;;  %vm342_vm15 = vcmask 1048512  }
   0xd   :  { %v517_v29 = vand.u32 127, %v233_v16  ;;  %v521_v41 = vshrl.u32 %v233_v16, 7 }
   0xe   :  { %68 = vadd.xlane.f32.xlu0 %v67_v19  ;;  %71 = vadd.xlane.f32.xlu1 %v70_v20 }
   0xf   :  { %v246_v42 = vadd.s32 4294967280, %v517_v29 }
  0x12   :  { %74 = vadd.xlane.f32.xlu0 %v73_v25  ;;  %77 = vadd.xlane.f32.xlu1 %v76_v26 }
  0x16   :  { %80 = vadd.xlane.f32.xlu0 %v79_v31  ;;  %83 = vadd.xlane.f32.xlu1 %v82_v32 }
  0x1a   :  { %86 = vadd.xlane.f32.xlu0 %v85_v37  ;;  %89 = vadd.xlane.f32.xlu1 %v88_v38 }
  0x1e   :  { %92 = vadd.xlane.f32.xlu0 %v91_v43  ;;  %95 = vadd.xlane.f32.xlu1 %v94_v44 }
  0x22   :  { %98 = vadd.xlane.f32.xlu0 %v97_v47  ;;  %101 = vadd.xlane.f32.xlu1 %v100_v48 }
  0x93   :  { %v57_v50 = vpop.xlane.xlu0 %56  ;;  %v63_v51 = vpop.xlane.xlu1 %62 }
  0x94   :  { %v105_v52 = vadd.f32 %v505_v49, %v57_v50  ;;  %v107_v53 = vadd.f32 %v505_v49, %v63_v51 }
  0x96   :  { %v121_v54 = vsub.f32 0.0, %v105_v52  ;;  %v123_v55 = vsub.f32 0.0, %v107_v53  ;;  %v239_v52 = vadd.s32 4294967288, %v517_v29 }
  0x97   :  { %v60_v56 = vpop.xlane.xlu0 %59  ;;  %v66_v57 = vpop.xlane.xlu1 %65 }
  0x98   :  { %v137_v58 = vmul.f32 1.442695, %v121_v54  ;;  %v141_v59 = vmul.f32 1.442695, %v123_v55  ;;  %v106_v60 = vadd.f32 %v505_v49, %v60_v56  ;;  %v108_v61 = vadd.f32 %v505_v49, %v66_v57 }
  0x9a   :  { %351 = vpow2.f32 %v137_v58  ;;  %v122_v62 = vsub.f32 0.0, %v106_v60  ;;  %v124_v63 = vsub.f32 0.0, %v108_v61  ;;  %v237_v58 = vsub.s32 %v517_v29, %v521_v41 }
  0x9b   :  { %353 = vpow2.f32 %v141_v59  ;;  %v69_v0 = vpop.xlane.xlu0 %68  ;;  %v72_v1 = vpop.xlane.xlu1 %71  ;;  %v249_v59 = vsub.s32 %v246_v42, %v521_v41  ;;  %v253_v60 = vadd.s32 4294967272, %v517_v29 }
  0x9c   :  { %v139_v2 = vmul.f32 1.442695, %v122_v62  ;;  %v143_v3 = vmul.f32 1.442695, %v124_v63  ;;  %v109_v4 = vadd.f32 %v505_v49, %v69_v0  ;;  %v110_v5 = vadd.f32 %v505_v49, %v72_v1 }
  0x9e   :  { %355 = vpow2.f32 %v139_v2  ;;  %v125_v6 = vsub.f32 0.0, %v109_v4  ;;  %v126_v7 = vsub.f32 0.0, %v110_v5  ;;  %v260_v4 = vadd.s32 4294967264, %v517_v29 }
  0x9f   :  { %357 = vpow2.f32 %v143_v3  ;;  %v75_v8 = vpop.xlane.xlu0 %74  ;;  %v78_v9 = vpop.xlane.xlu1 %77 }
  0xa0   :  { %v145_v10 = vmul.f32 1.442695, %v125_v6  ;;  %v147_v11 = vmul.f32 1.442695, %v126_v7  ;;  %v111_v12 = vadd.f32 %v505_v49, %v75_v8  ;;  %v112_v13 = vadd.f32 %v505_v49, %v78_v9 }
  0xa1   :  { %v242_v8 = vsub.s32 %v239_v52, %v521_v41 }
  0xa2   :  { %359 = vpow2.f32 %v145_v10  ;;  %v127_v14 = vsub.f32 0.0, %v111_v12  ;;  %v128_v15 = vsub.f32 0.0, %v112_v13  ;;  %v267_v12 = vadd.s32 4294967256, %v517_v29 }
  0xa3   :  { %361 = vpow2.f32 %v147_v11  ;;  %v81_v17 = vpop.xlane.xlu0 %80  ;;  %v84_v18 = vpop.xlane.xlu1 %83  ;;  %v256_v11 = vsub.s32 %v253_v60, %v521_v41 }
  0xa4   :  { %v352_v19 = vpop.eup %351  ;;  %v149_v20 = vmul.f32 1.442695, %v127_v14  ;;  %v113_v21 = vadd.f32 %v505_v49, %v81_v17  ;;  %v114_v22 = vadd.f32 %v505_v49, %v84_v18  ;;  %v151_v25 = vmul.f32 1.442695, %v128_v15 }
  0xa5   :  { %v354_v23 = vpop.eup %353  ;;  %v169_v24 = vadd.f32 1.0, %v352_v19 }
  0xa6   :  { %v171_v26 = vadd.f32 1.0, %v354_v23  ;;  %363 = vpow2.f32 %v149_v20  ;;  %v129_v27 = vsub.f32 0.0, %v113_v21  ;;  %v130_v28 = vsub.f32 0.0, %v114_v22 }
  0xa7   :  { %365 = vrcp.f32 %v169_v24  ;;  %v87_v30 = vpop.xlane.xlu0 %86  ;;  %v90_v31 = vpop.xlane.xlu1 %89  ;;  %v274_v23 = vadd.s32 4294967248, %v517_v29 }
  0xa8   :  { %v356_v32 = vpop.eup %355  ;;  %367 = vrcp.f32 %v171_v26  ;;  %v153_v33 = vmul.f32 1.442695, %v129_v27  ;;  %v115_v34 = vadd.f32 %v505_v49, %v87_v30  ;;  %v155_v37 = vmul.f32 1.442695, %v130_v28 }
  0xa9   :  { %v358_v35 = vpop.eup %357  ;;  %v170_v36 = vadd.f32 1.0, %v356_v32  ;;  %369 = vpow2.f32 %v151_v25  ;;  %v116_v38 = vadd.f32 %v505_v49, %v90_v31  ;;  %v270_v27 = vsub.s32 %v267_v12, %v521_v41 }
  0xaa   :  { %v172_v39 = vadd.f32 1.0, %v358_v35  ;;  %371 = vpow2.f32 %v153_v33  ;;  %v131_v40 = vsub.f32 0.0, %v115_v34  ;;  %v281_v31 = vadd.s32 4294967240, %v517_v29 }
  0xab   :  { %373 = vrcp.f32 %v170_v36  ;;  %v132_v43 = vsub.f32 0.0, %v116_v38  ;;  %v93_v44 = vpop.xlane.xlu0 %92  ;;  %v96_v45 = vpop.xlane.xlu1 %95  ;;  %v288_v35 = vadd.s32 4294967232, %v517_v29  ;;  %v323_v12 = vadd.s32 4294967192, %v517_v29 }
  0xac   :  { %v360_v46 = vpop.eup %359  ;;  %375 = vrcp.f32 %v172_v39  ;;  %v157_v47 = vmul.f32 1.442695, %v131_v40  ;;  %v117_v48 = vadd.f32 %v505_v49, %v93_v44  ;;  %v118_v50 = vadd.f32 %v505_v49, %v96_v45 }
  0xad   :  { %v362_v51 = vpop.eup %361  ;;  %v173_v53 = vadd.f32 1.0, %v360_v46  ;;  %377 = vpow2.f32 %v155_v37  ;;  %v159_v54 = vmul.f32 1.442695, %v132_v43  ;;  %v277_v39 = vsub.s32 %v274_v23, %v521_v41 }
  0xae   :  { %v174_v55 = vadd.f32 1.0, %v362_v51  ;;  %379 = vpow2.f32 %v157_v47  ;;  %v133_v56 = vsub.f32 0.0, %v117_v48  ;;  %v134_v57 = vsub.f32 0.0, %v118_v50 }
  0xaf   :  { %381 = vrcp.f32 %v173_v53  ;;  %v99_v61 = vpop.xlane.xlu0 %98  ;;  %v102_v62 = vpop.xlane.xlu1 %101  ;;  %v284_v44 = vsub.s32 %v281_v31, %v521_v41  ;;  %v291_v48 = vsub.s32 %v288_v35, %v521_v41  ;;  %v295_v50 = vadd.s32 4294967224, %v517_v29 }
  0xb0   :  { %v364_v63 = vpop.eup %363  ;;  %383 = vrcp.f32 %v174_v55  ;;  %v161_v0 = vmul.f32 1.442695, %v133_v56  ;;  %v163_v1 = vmul.f32 1.442695, %v134_v57  ;;  %v119_v2 = vadd.f32 %v505_v49, %v99_v61 }
  0xb1   :  { %v366_v3 = vpop.eup %365  ;;  %v175_v5 = vadd.f32 1.0, %v364_v63  ;;  %385 = vpow2.f32 %v159_v54  ;;  %v120_v6 = vadd.f32 %v505_v49, %v102_v62  ;;  %v263_v49 = vsub.s32 %v260_v4, %v521_v41 }
  0xb2   :  { %v368_v7 = vpop.eup %367  ;;  %387 = vpow2.f32 %v161_v0  ;;  %v135_v9 = vsub.f32 0.0, %v119_v2  ;;  %v238_v21 = vrot.slane %v366_v3, %v237_v58  ;;  %v302_v55 = vadd.s32 4294967216, %v517_v29 }
  0xb3   :  { %v370_v10 = vpop.eup %369  ;;  %389 = vrcp.f32 %v175_v5  ;;  %v136_v13 = vsub.f32 0.0, %v120_v6  ;;  %v250_v25 = vrot.slane %v368_v7, %v249_v59  ;;  %v309_v58 = vadd.s32 4294967208, %v517_v29 }
  0xb4   :  { %v372_v14 = vpop.eup %371  ;;  %v176_v15 = vadd.f32 1.0, %v370_v10  ;;  %391 = vpow2.f32 %v163_v1  ;;  %v165_v16 = vmul.f32 1.442695, %v135_v9  ;;  %v298_v62 = vsub.s32 %v295_v50, %v521_v41 }
  0xb5   :  { %v374_v17 = vpop.eup %373  ;;  %v177_v18 = vadd.f32 1.0, %v372_v14  ;;  %v167_v19 = vmul.f32 1.442695, %v136_v13  ;;  %v305_v2 = vsub.s32 %v302_v55, %v521_v41  ;;  %v316_v3 = vadd.s32 4294967200, %v517_v29 }
  0xb6   :  { %v376_v20 = vpop.eup %375  ;;  %v243_v22 = vrot.slane %v374_v17, %v242_v8  ;;  %393 = vrcp.f32 %v176_v15  ;;  %v312_v7 = vsub.s32 %v309_v58, %v521_v41  ;;  %v330_v17 = vadd.s32 4294967184, %v517_v29 }
  0xb7   :  { %v378_v24 = vpop.eup %377  ;;  %v257_v26 = vrot.slane %v376_v20, %v256_v11  ;;  %395 = vrcp.f32 %v177_v18  ;;  %v319_v15 = vsub.s32 %v316_v3, %v521_v41  ;;  %v326_v20 = vsub.s32 %v323_v12, %v521_v41 }
  0xb8   :  { %v380_v28 = vpop.eup %379  ;;  %v245_v30 = vsel %vm244_vm1, %v243_v22, %v238_v21  ;;  %v178_v32 = vadd.f32 1.0, %v378_v24  ;;  %397 = vpow2.f32 %v165_v16  ;;  %v337_v21 = vadd.s32 4294967176, %v517_v29 }
  0xb9   :  { %v382_v33 = vpop.eup %381  ;;  %v252_v34 = vsel %vm251_vm2, %v250_v25, %v245_v30  ;;  %v179_v36 = vadd.f32 1.0, %v380_v28  ;;  %399 = vpow2.f32 %v167_v19  ;;  %v333_v25 = vsub.s32 %v330_v17, %v521_v41 }
  0xba   :  { %v384_v37 = vpop.eup %383  ;;  %v264_v38 = vrot.slane %v382_v33, %v263_v49  ;;  %401 = vrcp.f32 %v178_v32  ;;  %v259_v42 = vsel %vm258_vm3, %v257_v26, %v252_v34  ;;  %v340_v28 = vsub.s32 %v337_v21, %v521_v41 }
  0xbb   :  { %v386_v40 = vpop.eup %385  ;;  %403 = vrcp.f32 %v179_v36  ;;  %v271_v47 = vrot.slane %v384_v37, %v270_v27 }
  0xbc   :  { %v388_v43 = vpop.eup %387  ;;  %v180_v45 = vadd.f32 1.0, %v386_v40  ;;  %v266_v53 = vsel %vm265_vm4, %v264_v38, %v259_v42 }
  0xbd   :  { %v390_v46 = vpop.eup %389  ;;  %v181_v51 = vadd.f32 1.0, %v388_v43  ;;  %v273_v60 = vsel %vm272_vm5, %v271_v47, %v266_v53 }
  0xbe   :  { %v392_v52 = vpop.eup %391  ;;  %v278_v54 = vrot.slane %v390_v46, %v277_v39  ;;  %405 = vrcp.f32 %v180_v45 }
  0xbf   :  { %407 = vrcp.f32 %v181_v51  ;;  %v182_v56 = vadd.f32 1.0, %v392_v52 }
  0xc0   :  { %v394_v57 = vpop.eup %393  ;;  %v280_v0 = vsel %vm279_vm6, %v278_v54, %v273_v60 }
  0xc1   :  { %v396_v59 = vpop.eup %395  ;;  %v285_v61 = vrot.slane %v394_v57, %v284_v44  ;;  %409 = vrcp.f32 %v182_v56 }
  0xc2   :  { %v398_v63 = vpop.eup %397  ;;  %v292_v1 = vrot.slane %v396_v59, %v291_v48 }
  0xc3   :  { %v400_v4 = vpop.eup %399  ;;  %v183_v5 = vadd.f32 1.0, %v398_v63  ;;  %v287_v10 = vsel %vm286_vm7, %v285_v61, %v280_v0 }
  0xc4   :  { %v402_v6 = vpop.eup %401  ;;  %v184_v8 = vadd.f32 1.0, %v400_v4  ;;  %v294_v13 = vsel %vm293_vm8, %v292_v1, %v287_v10 }
  0xc5   :  { %v404_v9 = vpop.eup %403  ;;  %v299_v11 = vrot.slane %v402_v6, %v298_v62  ;;  %411 = vrcp.f32 %v183_v5 }
  0xc6   :  { %v306_v14 = vrot.slane %v404_v9, %v305_v2  ;;  %413 = vrcp.f32 %v184_v8 }
  0xc7   :  { %v301_v18 = vsel %vm300_vm9, %v299_v11, %v294_v13 }
  0xc8   :  { %v406_v16 = vpop.eup %405  ;;  %v308_v22 = vsel %vm307_vm10, %v306_v14, %v301_v18 }
  0xc9   :  { %v408_v49 = vpop.eup %407  ;;  %v313_v19 = vrot.slane %v406_v16, %v312_v7 }
  0xca   :  { %v320_v23 = vrot.slane %v408_v49, %v319_v15 }
  0xcb   :  { %v410_v24 = vpop.eup %409  ;;  %v315_v26 = vsel %vm314_vm11, %v313_v19, %v308_v22 }
  0xcc   :  { %v327_v27 = vrot.slane %v410_v24, %v326_v20  ;;  %v322_v30 = vsel %vm321_vm12, %v320_v23, %v315_v26 }
  0xce   :  { %v329_v34 = vsel %vm328_vm13, %v327_v27, %v322_v30 }
  0xcf   :  { %v412_v31 = vpop.eup %411 }
  0xd0   :  { %v414_v32 = vpop.eup %413  ;;  %v334_v33 = vrot.slane %v412_v31, %v333_v25 }
  0xd1   :  { %v341_v29 = vrot.slane %v414_v32, %v340_v28 }
  0xd2   :  { %v336_v35 = vsel %vm335_vm14, %v334_v33, %v329_v34 }
  0xd3   :  { %v343_v36 = vsel %vm342_vm15, %v341_v29, %v336_v35 }
  0xd4   :  { %345 = vst [vmem:[%s571_s3] sm:$0x1] %v343_v36 }

</bundles_post_ra>
